<compile_context>
chip_gen: v6e
topology: v6e:2x2x1
jax: 0.10.0
libtpu: 0.0.40
codegen_flags: <defaults>
</compile_context>

<pallas_src>
import functools

import jax
import jax.numpy as jnp
from jax.experimental import pallas as pl
from jax.experimental.pallas import tpu as pltpu


def _round_up(x, m):
    return (x + m - 1) // m * m


# ----------------------------------------------------------------------------
# Fused kernel: all linear layers + ReLU + stable softmax in one body.
#   inputs : x (tile_b, in0), w_i (in_i, out_i)   [weights stored (in, out)]
#   outputs: a_i (tile_b, out_i) for every layer, probs (tile_b, out_last)
# The running activation `h` never leaves the chip; only the per-layer
# pre-activations and the final probabilities are written back to HBM.
# ----------------------------------------------------------------------------
def _fused_mlp_kernel(num_layers, matmul_dtype, x_ref, *refs):
    w_refs = refs[:num_layers]
    a_refs = refs[num_layers:2 * num_layers]
    probs_ref = refs[2 * num_layers]

    f32 = jnp.dtype(jnp.float32)
    h = x_ref[...]                                      # (tile_b, in0) f32
    for i in range(num_layers):                         # unrolled at trace time
        w = w_refs[i][...]
        if jnp.dtype(matmul_dtype) != f32:
            # bf16 operands at the MXU boundary only (v6e/v7x bf16 roofline);
            # accumulation stays f32, elementwise work stays f32.
            a = jnp.dot(h.astype(matmul_dtype), w.astype(matmul_dtype),
                        preferred_element_type=jnp.float32)
        else:
            a = jnp.dot(h, w, preferred_element_type=jnp.float32)
        a_refs[i][...] = a.astype(a_refs[i].dtype)      # pre-activation out
        h = jnp.maximum(a, 0.0)                         # ReLU (f32, VPU)

    # Numerically-stable softmax over the last dim.  Matches torch: the
    # activation IS applied to the final layer's pre-activation first.
    m = jnp.max(h, axis=-1, keepdims=True)
    e = jnp.exp(h - m)
    s = jnp.sum(e, axis=-1, keepdims=True)
    probs_ref[...] = (e / s).astype(probs_ref.dtype)    # exact divide


# ----------------------------------------------------------------------------
# Wrapper: flatten input, pad batch to a full sublane tile, single pallas_call
# with a "parallel" batch grid axis; weights stay resident across batch tiles.
# ----------------------------------------------------------------------------
@functools.partial(jax.jit, static_argnames=("matmul_dtype",))
def network_forward(x, weights, *, matmul_dtype=jnp.float32):
    """Forward pass of `Network` (bias-free Linears + ReLU + softmax).

    x:        any shape with a leading batch dim (flattened from dim 1).
    weights:  list of f32 arrays in (in_features, out_features) layout — i.e.
              the transpose of nn.Linear.weight, done ONCE at init time, not
              per call.

    Returns (probs, a_list), matching Network.forward with activation=relu.
    """
    x2 = x.reshape(x.shape[0], -1).astype(jnp.float32)  # torch.flatten(x, 1)
    b, in0 = x2.shape

    num_layers = len(weights)
    out_dims = [int(w.shape[1]) for w in weights]

    # Sublane / MXU-row utilization: f32 vregs are (8, 128); B=2 would leave
    # 6/8 sublanes of every vector op and >98% of the MXU rows idle.  Pad the
    # batch up to the tile size (8 rows here; 256-row tiles for real batches).
    tile_b = min(256, _round_up(b, 8))
    bp = _round_up(b, tile_b)
    if bp != b:
        x2 = jnp.pad(x2, ((0, bp - b), (0, 0)))

    grid = (bp // tile_b,)

    # Input specs: x is tiled along the batch grid axis; every weight is a
    # full-array block with a CONSTANT index_map along that axis, so it is
    # DMA'd into VMEM once and reused for every batch tile (no re-streaming
    # of the dominant weight traffic).
    in_specs = [pl.BlockSpec((tile_b, in0), lambda i: (i, 0))] + [
        pl.BlockSpec(w.shape, lambda i: (0, 0)) for w in weights
    ]
    out_shapes = tuple(
        jax.ShapeDtypeStruct((bp, d), jnp.float32) for d in out_dims
    ) + (jax.ShapeDtypeStruct((bp, out_dims[-1]), jnp.float32),)
    out_specs = tuple(
        pl.BlockSpec((tile_b, d), lambda i: (i, 0)) for d in out_dims
    ) + (pl.BlockSpec((tile_b, out_dims[-1]), lambda i: (i, 0)),)

    weight_elems = sum(int(w.shape[0]) * int(w.shape[1]) for w in weights)
    cost = pl.CostEstimate(
        flops=2 * bp * weight_elems,
        transcendentals=bp * out_dims[-1],               # exp in the softmax
        bytes_accessed=4 * (bp * in0 + weight_elems
                            + sum(bp * d for d in out_dims)
                            + bp * out_dims[-1]),
    )

    outs = pl.pallas_call(
        functools.partial(_fused_mlp_kernel, num_layers, jnp.dtype(matmul_dtype)),
        grid=grid,
        out_shape=out_shapes,
        in_specs=in_specs,
        out_specs=out_specs,
        compiler_params=pltpu.CompilerParams(
            # Batch tiles are independent -> shard across v7x's 2 TensorCores.
            dimension_semantics=("parallel",)),
        cost_estimate=cost,
    )(x2, *weights)

    # Strip the batch padding (tiny slices; negligible at any scale).
    a_list = [a[:b] for a in outs[:num_layers]]
    probs = outs[num_layers][:b]
    return probs, a_list


# ----------------------------------------------------------------------------
# Deterministic parameter init (mirrors nn.Linear's Kaiming-uniform bound,
# bias=False).  Weights are stored directly in (in_features, out_features)
# layout — the one-time transpose relative to PyTorch convention happens HERE,
# at init, never inside the jitted forward.
# ----------------------------------------------------------------------------
def init_weights(key, node):
    weights = []
    for i in range(len(node) - 1):
        key, sub = jax.random.split(key)
        in_f, out_f = node[i], node[i + 1]
        bound = 1.0 / jnp.sqrt(in_f)
        w_io = jax.random.uniform(
            sub, (in_f, out_f), dtype=jnp.float32, minval=-bound, maxval=bound
        )
        weights.append(w_io)
    return weights


if __name__ == "__main__":
    key = jax.random.PRNGKey(0)
    k_x, k_w = jax.random.split(key)

    # Small shapes: input (batch=2, C=4, H=4, W=4) -> 64 flattened features.
    node = [64, 32, 16]
    x = jax.random.normal(k_x, (2, 4, 4, 4), dtype=jnp.float32)
    weights = init_weights(k_w, node)                    # (in, out) layout

    probs, a_list = network_forward(x, weights)
    jax.block_until_ready(probs)
    for a in a_list:
        jax.block_until_ready(a)

    # Pure-JAX reference of the same math (weights already (in, out)).
    xf = x.reshape(x.shape[0], -1)
    ref_a = []
    h = xf
    for w in weights:
        a = h @ w
        ref_a.append(a)
        h = jnp.maximum(a, 0.0)
    ref_probs = jax.nn.softmax(h, axis=-1)

    assert probs.shape == (2, node[-1])
    assert len(a_list) == len(ref_a)
    assert all(a.shape == ra.shape for a, ra in zip(a_list, ref_a))
    assert all(
        jnp.allclose(a, ra, atol=1e-5) for a, ra in zip(a_list, ref_a)
    ), "pre-activation mismatch"
    assert jnp.allclose(probs, ref_probs, atol=1e-5), "softmax mismatch"
    assert jnp.allclose(jnp.sum(probs, axis=-1), 1.0, atol=1e-5)

    print("KERNEL_OK")
</pallas_src>

<mosaic_0001>
module attributes {stable_mosaic.version = 11 : i64} {
  func.func @_fused_mlp_kernel(%arg0: i32, %arg1: memref<8x64xf32, #tpu.memory_space<vmem>>, %arg2: memref<64x32xf32, #tpu.memory_space<vmem>>, %arg3: memref<32x16xf32, #tpu.memory_space<vmem>>, %arg4: memref<8x32xf32, #tpu.memory_space<vmem>>, %arg5: memref<8x16xf32, #tpu.memory_space<vmem>>, %arg6: memref<8x16xf32, #tpu.memory_space<vmem>>) attributes {dimension_semantics = [#tpu.dimension_semantics<parallel>], iteration_bounds = array<i64: 1>, scalar_prefetch = 0 : i64, scratch_operands = 0 : i64, tpu.core_type = #tpu.core_type<tc>, window_params = [{transform_indices = @transform_0, window_bounds = array<i64: 8, 64>}, {pipeline_mode = #tpu.pipeline_mode<synchronous>, transform_indices = @transform_1, window_bounds = array<i64: 64, 32>}, {pipeline_mode = #tpu.pipeline_mode<synchronous>, transform_indices = @transform_2, window_bounds = array<i64: 32, 16>}, {transform_indices = @transform_3, window_bounds = array<i64: 8, 32>}, {transform_indices = @transform_4, window_bounds = array<i64: 8, 16>}, {transform_indices = @transform_5, window_bounds = array<i64: 8, 16>}]} {
    %c0 = arith.constant 0 : index
    %c0_0 = arith.constant 0 : index
    %0 = vector.load %arg1[%c0, %c0_0] : memref<8x64xf32, #tpu.memory_space<vmem>>, vector<8x64xf32>
    %c0_1 = arith.constant 0 : index
    %c0_2 = arith.constant 0 : index
    %1 = vector.load %arg2[%c0_1, %c0_2] : memref<64x32xf32, #tpu.memory_space<vmem>>, vector<64x32xf32>
    %cst = arith.constant dense<0.000000e+00> : vector<8x32xf32>
    %2 = tpu.matmul %0, %1, %cst {dimension_numbers = #tpu.dot_dimension_numbers<[1], [0], [0], [1], [0, 0, 1, 1], [], []>} : vector<8x64xf32>, vector<64x32xf32>, vector<8x32xf32> -> vector<8x32xf32>
    %c0_3 = arith.constant 0 : index
    %c0_4 = arith.constant 0 : index
    %3 = vector.load %arg4[%c0_3, %c0_4] : memref<8x32xf32, #tpu.memory_space<vmem>>, vector<8x32xf32>
    tpu.vector_store %arg4[%c0_3, %c0_4], %2 {strides = array<i32>} : memref<8x32xf32, #tpu.memory_space<vmem>>, vector<8x32xf32>,
    %cst_5 = arith.constant 0.000000e+00 : f32
    %4 = vector.broadcast %cst_5 : f32 to vector<8x32xf32>
    %5 = arith.maximumf %2, %4 : vector<8x32xf32>
    %c0_6 = arith.constant 0 : index
    %c0_7 = arith.constant 0 : index
    %6 = vector.load %arg3[%c0_6, %c0_7] : memref<32x16xf32, #tpu.memory_space<vmem>>, vector<32x16xf32>
    %cst_8 = arith.constant dense<0.000000e+00> : vector<8x16xf32>
    %7 = tpu.matmul %5, %6, %cst_8 {dimension_numbers = #tpu.dot_dimension_numbers<[1], [0], [0], [1], [0, 0, 1, 1], [], []>} : vector<8x32xf32>, vector<32x16xf32>, vector<8x16xf32> -> vector<8x16xf32>
    %c0_9 = arith.constant 0 : index
    %c0_10 = arith.constant 0 : index
    %8 = vector.load %arg5[%c0_9, %c0_10] : memref<8x16xf32, #tpu.memory_space<vmem>>, vector<8x16xf32>
    tpu.vector_store %arg5[%c0_9, %c0_10], %7 {strides = array<i32>} : memref<8x16xf32, #tpu.memory_space<vmem>>, vector<8x16xf32>,
    %cst_11 = arith.constant 0.000000e+00 : f32
    %9 = vector.broadcast %cst_11 : f32 to vector<8x16xf32>
    %10 = arith.maximumf %7, %9 : vector<8x16xf32>
    %cst_12 = arith.constant dense<0xFF800000> : vector<8xf32>
    %11 = vector.multi_reduction <maximumf>, %10, %cst_12 [1] : vector<8x16xf32> to vector<8xf32>
    %12 = vector.shape_cast %11 : vector<8xf32> to vector<8x1xf32>
    %13 = vector.broadcast %12 : vector<8x1xf32> to vector<8x16xf32>
    %14 = arith.subf %10, %13 : vector<8x16xf32>
    %15 = math.exp %14 : vector<8x16xf32>
    %cst_13 = arith.constant dense<0.000000e+00> : vector<8xf32>
    %16 = vector.multi_reduction <add>, %15, %cst_13 [1] : vector<8x16xf32> to vector<8xf32>
    %17 = vector.shape_cast %16 : vector<8xf32> to vector<8x1xf32>
    %18 = vector.broadcast %17 : vector<8x1xf32> to vector<8x16xf32>
    %19 = arith.divf %15, %18 : vector<8x16xf32>
    %c0_14 = arith.constant 0 : index
    %c0_15 = arith.constant 0 : index
    %20 = vector.load %arg6[%c0_14, %c0_15] : memref<8x16xf32, #tpu.memory_space<vmem>>, vector<8x16xf32>
    tpu.vector_store %arg6[%c0_14, %c0_15], %19 {strides = array<i32>} : memref<8x16xf32, #tpu.memory_space<vmem>>, vector<8x16xf32>,
    return
  }
  func.func @transform_0(%arg0: i32) -> (i32, i32) {
    %c0_i32 = arith.constant 0 : i32
    %c0_i32_0 = arith.constant 0 : i32
    return %arg0, %c0_i32 : i32, i32
  }
  func.func @transform_1(%arg0: i32) -> (i32, i32) {
    %c0_i32 = arith.constant 0 : i32
    %c0_i32_0 = arith.constant 0 : i32
    %c0_i32_1 = arith.constant 0 : i32
    return %c0_i32, %c0_i32_0 : i32, i32
  }
  func.func @transform_2(%arg0: i32) -> (i32, i32) {
    %c0_i32 = arith.constant 0 : i32
    %c0_i32_0 = arith.constant 0 : i32
    %c0_i32_1 = arith.constant 0 : i32
    return %c0_i32, %c0_i32_0 : i32, i32
  }
  func.func @transform_3(%arg0: i32) -> (i32, i32) {
    %c0_i32 = arith.constant 0 : i32
    %c0_i32_0 = arith.constant 0 : i32
    return %arg0, %c0_i32 : i32, i32
  }
  func.func @transform_4(%arg0: i32) -> (i32, i32) {
    %c0_i32 = arith.constant 0 : i32
    %c0_i32_0 = arith.constant 0 : i32
    return %arg0, %c0_i32 : i32, i32
  }
  func.func @transform_5(%arg0: i32) -> (i32, i32) {
    %c0_i32 = arith.constant 0 : i32
    %c0_i32_0 = arith.constant 0 : i32
    return %arg0, %c0_i32 : i32, i32
  }
}

</mosaic_0001>

<bundles_post_ra>
// kernel: network_forward.1
= control target key start
LH: loop header
LB: loop body
LE: loop exit
PB: predicated region body
PF: predicated region fallthrough
CT: control target
= control target key end

     0   :  { %v259_v0 = vmov 0.0   ;;  %vm260_vm0 = vmmov 0   ;;  %vm26_vm1 = vcmask 523264   ;;  %vm100_vm2 = vcmask 261120   ;;  %s343_s1 = inlined_call_operand.vmem [shape: f32[64,32], index: 1, kind: input, shape index: {}]   ;;  %s344_s2 = inlined_call_operand.vmem [shape: f32[32,16], index: 2, kind: input, shape index: {}]   ;;  %s345_s0 = inlined_call_operand.vmem [shape: f32[8,64], index: 0, kind: input, shape index: {}]   ;;  %s346_s3 = inlined_call_operand.vmem [shape: f32[8,32], index: 3, kind: output, shape index: {0}]   ;;  %s347_s4 = inlined_call_operand.vmem [shape: f32[8,16], index: 4, kind: output, shape index: {1}]   ;;  %s348_s5 = inlined_call_operand.vmem [shape: f32[8,16], index: 5, kind: output, shape index: {2}]  }
   0x1   :  { %223 = vmatprep.subr.mxu0 %v259_v0  ;;  %v25_v1 = vld [vmem:[%s343_s1 + $0x38] sm:$0xff]  ;;  %v24_v2 = vld [vmem:[%s343_s1 + $0x30] sm:$0xff]  ;;  %239 = vmatprep.mubr.msk.f32.mxu0 %vm260_vm0, %v259_v0  ;;  %v23_v3 = vld [vmem:[%s343_s1 + $0x28] sm:$0xff]  ;;  %vm180_vm3 = vcmask 130048  }
   0x2   :  { %224 = vmatpush3.msra.mxu0 %v25_v1  ;;  %242 = vmatprep.subr.mxu1 %v259_v0  ;;  %v106_v4 = vld [vmem:[%s344_s2 + $0x18] sm:$0xff]  ;;  %v105_v5 = vld [vmem:[%s344_s2 + $0x10] sm:$0xff]  ;;  %v22_v6 = vld [vmem:[%s343_s1 + $0x20] sm:$0xff] }
   0x3   :  { %225 = vmatprep.subr.mxu0 %v259_v0  ;;  %250 = vmatprep.mubr.msk.f32.mxu1 %vm260_vm0, %v259_v0  ;;  %v21_v7 = vld [vmem:[%s343_s1 + $0x18] sm:$0xff]  ;;  %v20_v8 = vld [vmem:[%s343_s1 + $0x10] sm:$0xff]  ;;  %v19_v9 = vld [vmem:[%s343_s1 + $0x8] sm:$0xff] }
   0x4   :  { %226 = vmatpush3.msra.mxu0 %v24_v2  ;;  %243 = vmatpush3.msra.mxu1 %v106_v4  ;;  %v18_v10 = vld [vmem:[%s343_s1] sm:$0xff]  ;;  %v104_v12 = vld [vmem:[%s344_s2 + $0x8] sm:$0xff] }
   0x5   :  { %227 = vmatprep.subr.mxu0 %v259_v0  ;;  %244 = vmatprep.subr.mxu1 %v259_v0  ;;  %v17_v11 = vld [vmem:[%s345_s0] sm:$0xff] }
   0x6   :  { %228 = vmatpush3.msra.mxu0 %v23_v3  ;;  %245 = vmatpush3.msra.mxu1 %v105_v5  ;;  %v103_v13 = vld [vmem:[%s344_s2] sm:$0xff] }
   0x7   :  { %229 = vmatprep.subr.mxu0 %v259_v0  ;;  %246 = vmatprep.subr.mxu1 %v259_v0 }
   0x8   :  { %230 = vmatpush3.msra.mxu0 %v22_v6  ;;  %247 = vmatpush3.msra.mxu1 %v104_v12 }
   0x9   :  { %231 = vmatprep.subr.mxu0 %v259_v0  ;;  %248 = vmatprep.subr.mxu1 %v259_v0 }
   0xa   :  { %232 = vmatpush3.msra.mxu0 %v21_v7  ;;  %249 = vmatpush3.msra.mxu1 %v103_v13 }
   0xb   :  { %233 = vmatprep.subr.mxu0 %v259_v0 }
   0xc   :  { %234 = vmatpush3.msra.mxu0 %v20_v8 }
   0xd   :  { %235 = vmatprep.subr.mxu0 %v259_v0 }
   0xe   :  { %236 = vmatpush3.msra.mxu0 %v19_v9 }
   0xf   :  { %237 = vmatprep.subr.mxu0 %v259_v0 }
  0x10   :  { %238 = vmatpush3.msra.mxu0 %v18_v10 }
  0x11   :  { %240 = vmatmul.mubr.msk.f32.vlgmr.msra.gmra.mxu0 %vm26_vm1, %v17_v11 }
  0xd1   :  { %v96_v14 = vpop.f32.mrf.mxu0 }
  0xd2   :  { %101 = vst.msk [vmem:[%s346_s3] sm:$0xff] %vm100_vm2, %v96_v14  ;;  %v102_v15 = vmax.f32 %v96_v14, 0.0 }
  0xd3   :  { %v241_v16 = vpop.f32.mrf.mxu0 }
  0xd4   :  { %251 = vmatmul.mubr.msk.f32.vlgmr.msra.gmra.mxu1 %vm100_vm2, %v102_v15 }
 0x194   :  { %v176_v17 = vpop.f32.mrf.mxu1 }
 0x195   :  { %181 = vst.msk [vmem:[%s347_s4] sm:$0xff] %vm180_vm3, %v176_v17  ;;  %v182_v18 = vmax.f32 %v176_v17, 0.0 }
 0x196   :  { %v252_v19 = vpop.f32.mrf.mxu1 }
 0x197   :  { %v183_v20 = vsel %vm180_vm3, %v182_v18, -inf }
 0x198   :  { %184 = vmax.xlane.f32.xlu0 %v183_v20 }
 0x221   :  { %v185_v21 = vpop.xlane.xlu0 %184 }
 0x222   :  { %v186_v22 = vsub.f32 %v182_v18, %v185_v21 }
 0x224   :  { %v187_v23 = vmul.f32 1.442695, %v186_v22 }
 0x226   :  { %255 = vpow2.f32 %v187_v23 }
 0x233   :  { %v256_v24 = vpop.eup %255 }
 0x234   :  { %v189_v25 = vsel %vm180_vm3, %v256_v24, 0.0 }
 0x235   :  { %190 = vadd.xlane.f32.xlu0 %v189_v25 }
 0x2be   :  { %v191_v26 = vpop.xlane.xlu0 %190 }
 0x2bf   :  { %257 = vrcp.f32 %v191_v26 }
 0x2cc   :  { %v258_v27 = vpop.eup %257 }
 0x2cd   :  { %v193_v28 = vmul.f32 %v258_v27, %v256_v24 }
 0x2cf   :  { %194 = vst.msk [vmem:[%s348_s5] sm:$0xff] %vm180_vm3, %v193_v28 }

</bundles_post_ra>
